<compile_context>
chip_gen: v5e
topology: v5e:2x2
jax: 0.10.0
libtpu: 0.0.40
codegen_flags: <defaults>
</compile_context>

<pallas_src>
import jax
import jax.numpy as jnp
from jax.experimental import pallas as pl
from jax.experimental.pallas import tpu as pltpu


def mlp_kernel(x_ref, w1_ref, b1_ref, w2_ref, b2_ref, w3_ref, b3_ref, o_ref):
    # Feature-major (lane-dense): batch is on the lane axis of every operand.
    xT = x_ref[...]                                                        # (10, TILE_B)

    h1 = jnp.dot(w1_ref[...], xT, preferred_element_type=jnp.float32) + b1_ref[...]
    h1 = jnp.maximum(h1, 0.0)                                              # (8, TILE_B)

    h2 = jnp.dot(w2_ref[...], h1, preferred_element_type=jnp.float32) + b2_ref[...]
    h2 = jnp.maximum(h2, 0.0)                                              # (4, TILE_B)

    out = jnp.dot(w3_ref[...], h2, preferred_element_type=jnp.float32) + b3_ref[...]
    o_ref[...] = out.astype(o_ref.dtype)                                   # (2, TILE_B)


def _round_up(n, m):
    return ((n + m - 1) // m) * m


def net_forward(x, params, *, tile_b=8192):
    """x: (B, 10) float32 -> (B, 2) float32 (PyTorch Net.forward semantics)."""
    w1, b1, w2, b2, w3, b3 = params
    B, F = x.shape

    # Wrapper-side transpose to the lane-dense layout (x is only 40 B/row; this is cheap).
    xT = jnp.transpose(x)                                                  # (10, B)

    # Tile sizing:
    #  - B <= 256: single full-array block (block dim == array dim is always legal).
    #  - otherwise: clamp to ~ceil(B/2) rounded up to 256 so there are >= 2 grid steps
    #    (v7x megacore sharding), keeping the lane dim a multiple of 128/256.
    if B <= 256:
        tile_b = B
    else:
        tile_b = min(tile_b, _round_up(pl.cdiv(B, 2), 256))
    num_tiles = pl.cdiv(B, tile_b)

    def resident(shape):
        # Constant block index across the grid -> stays in VMEM, no per-step DMA.
        return pl.BlockSpec(shape, lambda i: (0, 0))

    outT = pl.pallas_call(
        mlp_kernel,
        out_shape=jax.ShapeDtypeStruct((2, B), jnp.float32),
        grid=(num_tiles,),
        in_specs=[
            pl.BlockSpec((F, tile_b), lambda i: (0, i)),   # x^T: tiled along batch (lanes)
            resident(w1.shape), resident(b1.shape),
            resident(w2.shape), resident(b2.shape),
            resident(w3.shape), resident(b3.shape),
        ],
        out_specs=pl.BlockSpec((2, tile_b), lambda i: (0, i)),
        compiler_params=pltpu.CompilerParams(
            dimension_semantics=("parallel",),             # megacore sharding on v7x
        ),
    )(xT, w1, b1, w2, b2, w3, b3)

    return jnp.transpose(outT)                             # (B, 2)


def init_params(key):
    """Deterministic init mimicking PyTorch's default Linear init (uniform +-1/sqrt(fan_in)).
    Weights in PyTorch-native (out_features, in_features) layout; biases (out_features, 1)."""
    dims = [(10, 8), (8, 4), (4, 2)]
    params = []
    for i, (fan_in, fan_out) in enumerate(dims):
        kw, kb = jax.random.split(jax.random.fold_in(key, i))
        bound = 1.0 / jnp.sqrt(float(fan_in))
        w = jax.random.uniform(kw, (fan_out, fan_in), jnp.float32, -bound, bound)
        b = jax.random.uniform(kb, (fan_out, 1), jnp.float32, -bound, bound)
        params.extend([w, b])
    return tuple(params)


def reference_forward(x, params):
    w1, b1, w2, b2, w3, b3 = params
    h1 = jnp.maximum(x @ w1.T + b1.T, 0.0)
    h2 = jnp.maximum(h1 @ w2.T + b2.T, 0.0)
    return h2 @ w3.T + b3.T


if __name__ == "__main__":
    key = jax.random.PRNGKey(0)
    k_x, k_p = jax.random.split(key)
    params = init_params(k_p)

    # Small configs exercising: single full-array block (B=4) and a multi-tile grid with a
    # partial last block (B=300 -> tile_b=256 -> tiles of 256 and 44 columns).
    for B in (4, 300):
        x = jax.random.normal(jax.random.fold_in(k_x, B), (B, 10), jnp.float32)
        ref = reference_forward(x, params)

        out = jax.block_until_ready(net_forward(x, params))
        assert out.shape == (B, 2), out.shape
        assert jnp.allclose(out, ref, atol=1e-5, rtol=1e-5), "mismatch vs reference"

    print("KERNEL_OK")
</pallas_src>

<mosaic_0001>
module attributes {stable_mosaic.version = 11 : i64} {
  func.func @mlp_kernel(%arg0: i32, %arg1: memref<10x4xf32, #tpu.memory_space<vmem>>, %arg2: memref<8x10xf32, #tpu.memory_space<vmem>>, %arg3: memref<8x1xf32, #tpu.memory_space<vmem>>, %arg4: memref<4x8xf32, #tpu.memory_space<vmem>>, %arg5: memref<4x1xf32, #tpu.memory_space<vmem>>, %arg6: memref<2x4xf32, #tpu.memory_space<vmem>>, %arg7: memref<2x1xf32, #tpu.memory_space<vmem>>, %arg8: memref<2x4xf32, #tpu.memory_space<vmem>>) attributes {dimension_semantics = [#tpu.dimension_semantics<parallel>], iteration_bounds = array<i64: 1>, scalar_prefetch = 0 : i64, scratch_operands = 0 : i64, tpu.core_type = #tpu.core_type<tc>, window_params = [{transform_indices = @transform_0, window_bounds = array<i64: 10, 4>}, {pipeline_mode = #tpu.pipeline_mode<synchronous>, transform_indices = @transform_1, window_bounds = array<i64: 8, 10>}, {pipeline_mode = #tpu.pipeline_mode<synchronous>, transform_indices = @transform_2, window_bounds = array<i64: 8, 1>}, {pipeline_mode = #tpu.pipeline_mode<synchronous>, transform_indices = @transform_3, window_bounds = array<i64: 4, 8>}, {pipeline_mode = #tpu.pipeline_mode<synchronous>, transform_indices = @transform_4, window_bounds = array<i64: 4, 1>}, {pipeline_mode = #tpu.pipeline_mode<synchronous>, transform_indices = @transform_5, window_bounds = array<i64: 2, 4>}, {pipeline_mode = #tpu.pipeline_mode<synchronous>, transform_indices = @transform_6, window_bounds = array<i64: 2, 1>}, {transform_indices = @transform_7, window_bounds = array<i64: 2, 4>}]} {
    %c0 = arith.constant 0 : index
    %c0_0 = arith.constant 0 : index
    %0 = vector.load %arg1[%c0, %c0_0] : memref<10x4xf32, #tpu.memory_space<vmem>>, vector<10x4xf32>
    %c0_1 = arith.constant 0 : index
    %c0_2 = arith.constant 0 : index
    %1 = vector.load %arg2[%c0_1, %c0_2] : memref<8x10xf32, #tpu.memory_space<vmem>>, vector<8x10xf32>
    %cst = arith.constant dense<0.000000e+00> : vector<8x4xf32>
    %2 = tpu.matmul %1, %0, %cst {dimension_numbers = #tpu.dot_dimension_numbers<[1], [0], [0], [1], [0, 0, 1, 1], [], []>} : vector<8x10xf32>, vector<10x4xf32>, vector<8x4xf32> -> vector<8x4xf32>
    %c0_3 = arith.constant 0 : index
    %c0_4 = arith.constant 0 : index
    %3 = vector.load %arg3[%c0_3, %c0_4] : memref<8x1xf32, #tpu.memory_space<vmem>>, vector<8x1xf32>
    %4 = vector.broadcast %3 : vector<8x1xf32> to vector<8x4xf32>
    %5 = arith.addf %2, %4 : vector<8x4xf32>
    %cst_5 = arith.constant 0.000000e+00 : f32
    %6 = vector.broadcast %cst_5 : f32 to vector<8x4xf32>
    %7 = arith.maximumf %5, %6 : vector<8x4xf32>
    %c0_6 = arith.constant 0 : index
    %c0_7 = arith.constant 0 : index
    %8 = vector.load %arg4[%c0_6, %c0_7] : memref<4x8xf32, #tpu.memory_space<vmem>>, vector<4x8xf32>
    %cst_8 = arith.constant dense<0.000000e+00> : vector<4x4xf32>
    %9 = tpu.matmul %8, %7, %cst_8 {dimension_numbers = #tpu.dot_dimension_numbers<[1], [0], [0], [1], [0, 0, 1, 1], [], []>} : vector<4x8xf32>, vector<8x4xf32>, vector<4x4xf32> -> vector<4x4xf32>
    %c0_9 = arith.constant 0 : index
    %c0_10 = arith.constant 0 : index
    %10 = vector.load %arg5[%c0_9, %c0_10] : memref<4x1xf32, #tpu.memory_space<vmem>>, vector<4x1xf32>
    %11 = vector.broadcast %10 : vector<4x1xf32> to vector<4x4xf32>
    %12 = arith.addf %9, %11 : vector<4x4xf32>
    %cst_11 = arith.constant 0.000000e+00 : f32
    %13 = vector.broadcast %cst_11 : f32 to vector<4x4xf32>
    %14 = arith.maximumf %12, %13 : vector<4x4xf32>
    %c0_12 = arith.constant 0 : index
    %c0_13 = arith.constant 0 : index
    %15 = vector.load %arg6[%c0_12, %c0_13] : memref<2x4xf32, #tpu.memory_space<vmem>>, vector<2x4xf32>
    %cst_14 = arith.constant dense<0.000000e+00> : vector<2x4xf32>
    %16 = tpu.matmul %15, %14, %cst_14 {dimension_numbers = #tpu.dot_dimension_numbers<[1], [0], [0], [1], [0, 0, 1, 1], [], []>} : vector<2x4xf32>, vector<4x4xf32>, vector<2x4xf32> -> vector<2x4xf32>
    %c0_15 = arith.constant 0 : index
    %c0_16 = arith.constant 0 : index
    %17 = vector.load %arg7[%c0_15, %c0_16] : memref<2x1xf32, #tpu.memory_space<vmem>>, vector<2x1xf32>
    %18 = vector.broadcast %17 : vector<2x1xf32> to vector<2x4xf32>
    %19 = arith.addf %16, %18 : vector<2x4xf32>
    %c0_17 = arith.constant 0 : index
    %c0_18 = arith.constant 0 : index
    %20 = vector.load %arg8[%c0_17, %c0_18] : memref<2x4xf32, #tpu.memory_space<vmem>>, vector<2x4xf32>
    tpu.vector_store %arg8[%c0_17, %c0_18], %19 {strides = array<i32>} : memref<2x4xf32, #tpu.memory_space<vmem>>, vector<2x4xf32>,
    return
  }
  func.func @transform_0(%arg0: i32) -> (i32, i32) {
    %c0_i32 = arith.constant 0 : i32
    %c0_i32_0 = arith.constant 0 : i32
    return %c0_i32, %arg0 : i32, i32
  }
  func.func @transform_1(%arg0: i32) -> (i32, i32) {
    %c0_i32 = arith.constant 0 : i32
    %c0_i32_0 = arith.constant 0 : i32
    %c0_i32_1 = arith.constant 0 : i32
    return %c0_i32, %c0_i32_0 : i32, i32
  }
  func.func @transform_2(%arg0: i32) -> (i32, i32) {
    %c0_i32 = arith.constant 0 : i32
    %c0_i32_0 = arith.constant 0 : i32
    %c0_i32_1 = arith.constant 0 : i32
    return %c0_i32, %c0_i32_0 : i32, i32
  }
  func.func @transform_3(%arg0: i32) -> (i32, i32) {
    %c0_i32 = arith.constant 0 : i32
    %c0_i32_0 = arith.constant 0 : i32
    %c0_i32_1 = arith.constant 0 : i32
    return %c0_i32, %c0_i32_0 : i32, i32
  }
  func.func @transform_4(%arg0: i32) -> (i32, i32) {
    %c0_i32 = arith.constant 0 : i32
    %c0_i32_0 = arith.constant 0 : i32
    %c0_i32_1 = arith.constant 0 : i32
    return %c0_i32, %c0_i32_0 : i32, i32
  }
  func.func @transform_5(%arg0: i32) -> (i32, i32) {
    %c0_i32 = arith.constant 0 : i32
    %c0_i32_0 = arith.constant 0 : i32
    %c0_i32_1 = arith.constant 0 : i32
    return %c0_i32, %c0_i32_0 : i32, i32
  }
  func.func @transform_6(%arg0: i32) -> (i32, i32) {
    %c0_i32 = arith.constant 0 : i32
    %c0_i32_0 = arith.constant 0 : i32
    %c0_i32_1 = arith.constant 0 : i32
    return %c0_i32, %c0_i32_0 : i32, i32
  }
  func.func @transform_7(%arg0: i32) -> (i32, i32) {
    %c0_i32 = arith.constant 0 : i32
    %c0_i32_0 = arith.constant 0 : i32
    return %c0_i32, %arg0 : i32, i32
  }
}

</mosaic_0001>

<bundles_post_ra>
// kernel: tpu_custom_call.1
= control target key start
LH: loop header
LB: loop body
LE: loop exit
PB: predicated region body
PF: predicated region fallthrough
CT: control target
= control target key end

     0   :  { %vm40_vm0 = vcmask 1041408   ;;  %vm36_vm1 = vcmask 80896   ;;  %s254_s0 = inlined_call_operand.vmem [shape: f32[10,4], index: 0, kind: input, shape index: {}]   ;;  %s255_s1 = inlined_call_operand.vmem [shape: f32[8,10], index: 1, kind: input, shape index: {}]   ;;  %s256_s2 = inlined_call_operand.vmem [shape: f32[8,1], index: 2, kind: input, shape index: {}]   ;;  %s257_s3 = inlined_call_operand.vmem [shape: f32[4,8], index: 3, kind: input, shape index: {}]   ;;  %s258_s4 = inlined_call_operand.vmem [shape: f32[4,1], index: 4, kind: input, shape index: {}]   ;;  %s259_s5 = inlined_call_operand.vmem [shape: f32[2,4], index: 5, kind: input, shape index: {}]   ;;  %s260_s6 = inlined_call_operand.vmem [shape: f32[2,1], index: 6, kind: input, shape index: {}]   ;;  %s261_s7 = inlined_call_operand.hbm [shape: f32[2,4], index: 7, kind: output, shape index: {}]  }
   0x1   :  { %v28_v0 = vld [vmem:[%s254_s0 + $0x8] sm:$0x3]  ;;  %v27_v1 = vld [vmem:[%s254_s0] sm:$0xff] }
   0x2   :  { %150 = vmatpush.msk.msra.mxu0 %vm40_vm0, %v28_v0  ;;  %v29_v2 = vld [vmem:[%s255_s1] sm:$0xff] }
   0x3   :  { %v30_v3 = vld [vmem:[%s256_s2] sm:$0xff] }
   0x4   :  { %12 = vsyncpa [#allocation3], 0  ;;  %v185_v4 = vmov 0   ;;  %59 = vmatpush.msra.mxu0 %v27_v1  ;;  %v66_v5 = vld [vmem:[%s258_s4] sm:$0xf]  ;;  %vm72_vm2 = vcmask 64512  }
   0x5   :  { %157 = vset.pattern.permute.xlu0 %v185_v4  ;;  %158 = vset.pattern.permute.xlu1 %v185_v4  ;;  %v65_v10 = vld [vmem:[%s257_s3] sm:$0xf]  ;;  %vm108_vm3 = vcmask 1043456   ;;  %vm104_vm4 = vcmask 31744   ;;  %s186_s3 = smov [#allocation2]   ;;  %vm132_vm5 = vcmask 25600  }
   0x6   :  { %33 = vperm.xlu0 %157, %v30_v3   ;;  %151 = vmatmul.msk.f32.vlgmr.msra.gmra.mxu0 %vm36_vm1, %v29_v2  ;;  %v98_v11 = vld [vmem:[%s260_s6] sm:$0x3]  ;;  %s139_s13 = sshll.u32 %s186_s3, 4  ;;  %s141_s6 = sshll.u32 %s261_s7, 4  ;;  %s140_s13 = int_to_ptr.vmem [resolvable:$true] %s139_s13  ;;  %s142_s6 = int_to_ptr.hbm [resolvable:$true] %s141_s6 }
   0x7   :  { %101 = vperm.xlu1 %158, %v98_v11   ;;  %v97_v16 = vld [vmem:[%s259_s5] sm:$0x3] }
   0xe   :  { %69 = vperm.xlu0 %157, %v66_v5  }
  0x78   :  { %v34_v6 = vpop.permute.xlu0 %33 }
  0x79   :  { %v102_v17 = vpop.permute.xlu1 %101 }
  0x80   :  { %v70_v12 = vpop.permute.xlu0 %69 }
  0x83   :  { %v61_v7 = vpop.f32.mrf.mxu0 }
  0x84   :  { %v62_v8 = vadd.f32 %v61_v7, %v34_v6 }
  0x86   :  { %v64_v9 = vmax.f32 %v62_v8, 0.0 }
  0x88   :  { %91 = vmatpush.msra.mxu1 %v64_v9 }
  0x89   :  { %152 = vmatmul.msk.f32.vlgmr.msra.gmra.mxu1 %vm72_vm2, %v65_v10 }
 0x106   :  { %v93_v13 = vpop.f32.mrf.mxu1 }
 0x107   :  { %v94_v14 = vadd.f32 %v93_v13, %v70_v12 }
 0x109   :  { %v96_v15 = vmax.f32 %v94_v14, 0.0 }
 0x10b   :  { %153 = vmatpush.msk.msra.mxu2 %vm108_vm3, %v96_v15 }
 0x10c   :  { %154 = vmatmul.msk.f32.vlgmr.msra.gmra.mxu2 %vm104_vm4, %v97_v16 }
 0x18f   :  { %v129_v18 = vpop.f32.mrf.mxu2 }
 0x190   :  { %v130_v19 = vadd.f32 %v129_v18, %v102_v17 }
 0x192   :  { %133 = vst.msk [vmem:[#allocation2] sm:$0x3] %vm132_vm5, %v130_v19 }
 0x193   :  { %144 = dma.vmem_to_hbm [thread:$0]  %s140_s13, 32, %s142_s6, [#allocation3]  }
 0x194   :  { %183 = dma.done.wait [#allocation3], 32  }
 0x195   :  { %184 = vsyncadd [#allocation3], 4294967264 }
 0x196   :  { %149 = vsyncpa [#allocation3], 1 }

</bundles_post_ra>
